<compile_context>
chip_gen: v5e
topology: v5e:2x2
jax: 0.10.0
libtpu: 0.0.40
codegen_flags: <defaults>
</compile_context>

<pallas_src>
import jax
import jax.numpy as jnp
from jax.experimental import pallas as pl
from jax.experimental.pallas import tpu as pltpu


def mlp_kernel(x_ref, w1_ref, b1_ref, w2_ref, b2_ref, w3_ref, b3_ref, o_ref):
    x = x_ref[...]
    # fc1 + ReLU  (weights already [in, out]; biases already (1, out))
    h1 = jnp.maximum(
        jnp.dot(x, w1_ref[...], preferred_element_type=jnp.float32) + b1_ref[...],
        0.0)
    # fc2 + ReLU
    h2 = jnp.maximum(
        jnp.dot(h1, w2_ref[...], preferred_element_type=jnp.float32) + b2_ref[...],
        0.0)
    # out (no activation)
    q = jnp.dot(h2, w3_ref[...], preferred_element_type=jnp.float32) + b3_ref[...]
    o_ref[...] = q.astype(o_ref.dtype)


# --- tiling / budgeting ------------------------------------------------------

_MAX_TILE_B = 8192                 # rows; cap on the batch tile
_TARGET_X_BYTES_PER_STEP = 2 << 20  # aim each grid step to move ~2 MiB of x
_MIN_PALLAS_BATCH = 128            # below this, fused XLA is at least as fast


def _choose_tile_b(batch, state_dim):
    """Pick the batch tile: big enough that DMA >> per-step overhead,
    multiple of 8 (sublane), and >= 2 grid steps for large batches (v7x)."""
    rows_for_target = _TARGET_X_BYTES_PER_STEP // max(1, state_dim * 4)
    tile = int(min(_MAX_TILE_B, max(512, rows_for_target)))
    if batch <= tile:
        if batch >= 1024:
            # Split into two tiles so v7x's two TensorCores both get work.
            tile = -(-batch // 2)
        else:
            return batch  # single full-batch block (full-dim block is legal)
    tile = ((tile + 7) // 8) * 8   # multiple of 8 for the (8, 128) constraint
    return min(tile, batch)


def _vmem_budget_bytes(tile_b, state_dim, hidden, half, action_dim):
    f = 4  # f32
    weights = (state_dim * hidden + hidden
               + hidden * half + half
               + half * action_dim + action_dim) * f
    x_tiles = 2 * tile_b * state_dim * f      # double-buffered input tile
    out_tiles = 2 * tile_b * action_dim * f   # double-buffered output tile
    interm = tile_b * (hidden + half) * f     # h1 + h2 materialized per step
    return weights + x_tiles + out_tiles + interm


# --- wrapper -----------------------------------------------------------------

def prepare_params(torch_params):
    """One-time conversion from PyTorch nn.Linear layout ([out, in] weights,
    [out] biases) to the kernel layout ([in, out] weights, (1, out) biases).
    Do this once and reuse across calls."""
    return {
        "w1t": jnp.asarray(torch_params["w1"], jnp.float32).T,
        "b1": jnp.asarray(torch_params["b1"], jnp.float32).reshape(1, -1),
        "w2t": jnp.asarray(torch_params["w2"], jnp.float32).T,
        "b2": jnp.asarray(torch_params["b2"], jnp.float32).reshape(1, -1),
        "w3t": jnp.asarray(torch_params["w3"], jnp.float32).T,
        "b3": jnp.asarray(torch_params["b3"], jnp.float32).reshape(1, -1),
    }


def _xla_forward(x, p):
    h1 = jnp.maximum(x @ p["w1t"] + p["b1"], 0.0)
    h2 = jnp.maximum(h1 @ p["w2t"] + p["b2"], 0.0)
    return h2 @ p["w3t"] + p["b3"]


def nn_forward(x, prepared, *, min_pallas_batch=_MIN_PALLAS_BATCH):
    """Forward pass of the 3-layer Q-network (kernel-layout params from
    `prepare_params`)."""
    # Match `x.float()` of the PyTorch module (trace-time no-op for f32 x).
    if x.dtype != jnp.float32:
        x = x.astype(jnp.float32)

    w1t, b1 = prepared["w1t"], prepared["b1"]
    w2t, b2 = prepared["w2t"], prepared["b2"]
    w3t, b3 = prepared["w3t"], prepared["b3"]

    batch, state_dim = x.shape
    hidden = w1t.shape[1]
    half = w2t.shape[1]
    action_dim = w3t.shape[1]

    # Tiny batches: custom-call launch overhead dominates -> fused XLA path.
    if batch <= min_pallas_batch:
        return _xla_forward(x, prepared)

    tile_b = _choose_tile_b(batch, state_dim)
    grid = (pl.cdiv(batch, tile_b),)

    # Explicit VMEM budget (stays well below v7x's 64 MiB physical VMEM).
    budget = _vmem_budget_bytes(tile_b, state_dim, hidden, half, action_dim)
    vmem_limit = int(min(max(2 * budget, 32 << 20), 48 << 20))

    # Advisory cost so XLA can overlap neighboring HLOs in the RL step.
    flops = 2 * batch * (state_dim * hidden + hidden * half + half * action_dim)
    bytes_accessed = 4 * (batch * (state_dim + action_dim)
                          + state_dim * hidden + hidden
                          + hidden * half + half
                          + half * action_dim + action_dim)
    cost = pl.CostEstimate(flops=flops, transcendentals=0,
                           bytes_accessed=bytes_accessed)

    # Weights / biases: full-array blocks with a constant index map -> they
    # stay resident in VMEM for the whole grid.
    resident = lambda a: pl.BlockSpec(a.shape, lambda i: (0,) * a.ndim)

    return pl.pallas_call(
        mlp_kernel,
        out_shape=jax.ShapeDtypeStruct((batch, action_dim), jnp.float32),
        grid=grid,
        in_specs=[
            pl.BlockSpec((tile_b, state_dim), lambda i: (i, 0)),
            resident(w1t), resident(b1),
            resident(w2t), resident(b2),
            resident(w3t), resident(b3),
        ],
        out_specs=pl.BlockSpec((tile_b, action_dim), lambda i: (i, 0)),
        compiler_params=pltpu.CompilerParams(
            # Batch tiles are independent -> shard across TCs on v7x megacore.
            dimension_semantics=("parallel",),
            vmem_limit_bytes=vmem_limit,
        ),
        cost_estimate=cost,
    )(x, w1t, b1, w2t, b2, w3t, b3)


def reference_forward(x, torch_params):
    h1 = jnp.maximum(x.astype(jnp.float32) @ torch_params["w1"].T + torch_params["b1"], 0.0)
    h2 = jnp.maximum(h1 @ torch_params["w2"].T + torch_params["b2"], 0.0)
    return h2 @ torch_params["w3"].T + torch_params["b3"]


if __name__ == "__main__":
    # Small shapes consistent with the module's forward.
    batch, state_dim, hidden_dim, action_dim = 8, 16, 32, 4
    half = hidden_dim // 2

    key = jax.random.PRNGKey(0)
    ks = jax.random.split(key, 8)

    # Deterministic synthetic parameters (PyTorch nn.Linear layout: [out, in]).
    torch_params = {
        "w1": jax.random.normal(ks[0], (hidden_dim, state_dim), jnp.float32) * 0.1,
        "b1": jax.random.normal(ks[1], (hidden_dim,), jnp.float32) * 0.1,
        "w2": jax.random.normal(ks[2], (half, hidden_dim), jnp.float32) * 0.1,
        "b2": jax.random.normal(ks[3], (half,), jnp.float32) * 0.1,
        "w3": jax.random.normal(ks[4], (action_dim, half), jnp.float32) * 0.1,
        "b3": jax.random.normal(ks[5], (action_dim,), jnp.float32) * 0.1,
    }
    prepared = prepare_params(torch_params)  # one-time transpose / reshape

    # 1) Small-batch Pallas path (forced): single full-batch block, grid=(1,).
    x_small = jax.random.normal(ks[6], (batch, state_dim), jnp.float32)
    q_small = nn_forward(x_small, prepared, min_pallas_batch=0)
    jax.block_until_ready(q_small)
    assert q_small.shape == (batch, action_dim)
    assert jnp.allclose(q_small, reference_forward(x_small, torch_params),
                        atol=1e-4, rtol=1e-4)

    # 2) Default tiny-batch path: fused XLA fallback (no Pallas launch cost).
    q_fallback = nn_forward(x_small, prepared)
    jax.block_until_ready(q_fallback)
    assert jnp.allclose(q_fallback, reference_forward(x_small, torch_params),
                        atol=1e-4, rtol=1e-4)

    # 3) Larger batch exercises the batch-tiled, pipelined grid path with
    #    >= 2 grid steps (both v7x TensorCores get work).
    big_batch = 4096
    x_big = jax.random.normal(ks[7], (big_batch, state_dim), jnp.float32)
    q_big = nn_forward(x_big, prepared)
    jax.block_until_ready(q_big)
    assert q_big.shape == (big_batch, action_dim)
    assert jnp.allclose(q_big, reference_forward(x_big, torch_params),
                        atol=1e-4, rtol=1e-4)

    print("KERNEL_OK")
</pallas_src>

<mosaic_0001>
module attributes {stable_mosaic.version = 11 : i64} {
  func.func @mlp_kernel(%arg0: i32, %arg1: memref<8x16xf32, #tpu.memory_space<vmem>>, %arg2: memref<16x32xf32, #tpu.memory_space<vmem>>, %arg3: memref<1x32xf32, #tpu.memory_space<vmem>>, %arg4: memref<32x16xf32, #tpu.memory_space<vmem>>, %arg5: memref<1x16xf32, #tpu.memory_space<vmem>>, %arg6: memref<16x4xf32, #tpu.memory_space<vmem>>, %arg7: memref<1x4xf32, #tpu.memory_space<vmem>>, %arg8: memref<8x4xf32, #tpu.memory_space<vmem>>) attributes {dimension_semantics = [#tpu.dimension_semantics<parallel>], iteration_bounds = array<i64: 1>, scalar_prefetch = 0 : i64, scratch_operands = 0 : i64, tpu.core_type = #tpu.core_type<tc>, window_params = [{transform_indices = @transform_0, window_bounds = array<i64: 8, 16>}, {pipeline_mode = #tpu.pipeline_mode<synchronous>, transform_indices = @transform_1, window_bounds = array<i64: 16, 32>}, {pipeline_mode = #tpu.pipeline_mode<synchronous>, transform_indices = @transform_2, window_bounds = array<i64: 1, 32>}, {pipeline_mode = #tpu.pipeline_mode<synchronous>, transform_indices = @transform_3, window_bounds = array<i64: 32, 16>}, {pipeline_mode = #tpu.pipeline_mode<synchronous>, transform_indices = @transform_4, window_bounds = array<i64: 1, 16>}, {pipeline_mode = #tpu.pipeline_mode<synchronous>, transform_indices = @transform_5, window_bounds = array<i64: 16, 4>}, {pipeline_mode = #tpu.pipeline_mode<synchronous>, transform_indices = @transform_6, window_bounds = array<i64: 1, 4>}, {transform_indices = @transform_7, window_bounds = array<i64: 8, 4>}]} {
    %c0 = arith.constant 0 : index
    %c0_0 = arith.constant 0 : index
    %0 = vector.load %arg1[%c0, %c0_0] : memref<8x16xf32, #tpu.memory_space<vmem>>, vector<8x16xf32>
    %c0_1 = arith.constant 0 : index
    %c0_2 = arith.constant 0 : index
    %1 = vector.load %arg2[%c0_1, %c0_2] : memref<16x32xf32, #tpu.memory_space<vmem>>, vector<16x32xf32>
    %cst = arith.constant dense<0.000000e+00> : vector<8x32xf32>
    %2 = tpu.matmul %0, %1, %cst {dimension_numbers = #tpu.dot_dimension_numbers<[1], [0], [0], [1], [0, 0, 1, 1], [], []>} : vector<8x16xf32>, vector<16x32xf32>, vector<8x32xf32> -> vector<8x32xf32>
    %c0_3 = arith.constant 0 : index
    %c0_4 = arith.constant 0 : index
    %3 = vector.load %arg3[%c0_3, %c0_4] : memref<1x32xf32, #tpu.memory_space<vmem>>, vector<1x32xf32>
    %4 = vector.broadcast %3 : vector<1x32xf32> to vector<8x32xf32>
    %5 = arith.addf %2, %4 : vector<8x32xf32>
    %cst_5 = arith.constant 0.000000e+00 : f32
    %6 = vector.broadcast %cst_5 : f32 to vector<8x32xf32>
    %7 = arith.maximumf %5, %6 : vector<8x32xf32>
    %c0_6 = arith.constant 0 : index
    %c0_7 = arith.constant 0 : index
    %8 = vector.load %arg4[%c0_6, %c0_7] : memref<32x16xf32, #tpu.memory_space<vmem>>, vector<32x16xf32>
    %cst_8 = arith.constant dense<0.000000e+00> : vector<8x16xf32>
    %9 = tpu.matmul %7, %8, %cst_8 {dimension_numbers = #tpu.dot_dimension_numbers<[1], [0], [0], [1], [0, 0, 1, 1], [], []>} : vector<8x32xf32>, vector<32x16xf32>, vector<8x16xf32> -> vector<8x16xf32>
    %c0_9 = arith.constant 0 : index
    %c0_10 = arith.constant 0 : index
    %10 = vector.load %arg5[%c0_9, %c0_10] : memref<1x16xf32, #tpu.memory_space<vmem>>, vector<1x16xf32>
    %11 = vector.broadcast %10 : vector<1x16xf32> to vector<8x16xf32>
    %12 = arith.addf %9, %11 : vector<8x16xf32>
    %cst_11 = arith.constant 0.000000e+00 : f32
    %13 = vector.broadcast %cst_11 : f32 to vector<8x16xf32>
    %14 = arith.maximumf %12, %13 : vector<8x16xf32>
    %c0_12 = arith.constant 0 : index
    %c0_13 = arith.constant 0 : index
    %15 = vector.load %arg6[%c0_12, %c0_13] : memref<16x4xf32, #tpu.memory_space<vmem>>, vector<16x4xf32>
    %cst_14 = arith.constant dense<0.000000e+00> : vector<8x4xf32>
    %16 = tpu.matmul %14, %15, %cst_14 {dimension_numbers = #tpu.dot_dimension_numbers<[1], [0], [0], [1], [0, 0, 1, 1], [], []>} : vector<8x16xf32>, vector<16x4xf32>, vector<8x4xf32> -> vector<8x4xf32>
    %c0_15 = arith.constant 0 : index
    %c0_16 = arith.constant 0 : index
    %17 = vector.load %arg7[%c0_15, %c0_16] : memref<1x4xf32, #tpu.memory_space<vmem>>, vector<1x4xf32>
    %18 = vector.broadcast %17 : vector<1x4xf32> to vector<8x4xf32>
    %19 = arith.addf %16, %18 : vector<8x4xf32>
    %c0_17 = arith.constant 0 : index
    %c0_18 = arith.constant 0 : index
    %20 = vector.load %arg8[%c0_17, %c0_18] : memref<8x4xf32, #tpu.memory_space<vmem>>, vector<8x4xf32>
    tpu.vector_store %arg8[%c0_17, %c0_18], %19 {strides = array<i32>} : memref<8x4xf32, #tpu.memory_space<vmem>>, vector<8x4xf32>,
    return
  }
  func.func @transform_0(%arg0: i32) -> (i32, i32) {
    %c0_i32 = arith.constant 0 : i32
    %c0_i32_0 = arith.constant 0 : i32
    return %arg0, %c0_i32 : i32, i32
  }
  func.func @transform_1(%arg0: i32) -> (i32, i32) {
    %c0_i32 = arith.constant 0 : i32
    %c0_i32_0 = arith.constant 0 : i32
    %c0_i32_1 = arith.constant 0 : i32
    return %c0_i32, %c0_i32_0 : i32, i32
  }
  func.func @transform_2(%arg0: i32) -> (i32, i32) {
    %c0_i32 = arith.constant 0 : i32
    %c0_i32_0 = arith.constant 0 : i32
    %c0_i32_1 = arith.constant 0 : i32
    return %c0_i32, %c0_i32_0 : i32, i32
  }
  func.func @transform_3(%arg0: i32) -> (i32, i32) {
    %c0_i32 = arith.constant 0 : i32
    %c0_i32_0 = arith.constant 0 : i32
    %c0_i32_1 = arith.constant 0 : i32
    return %c0_i32, %c0_i32_0 : i32, i32
  }
  func.func @transform_4(%arg0: i32) -> (i32, i32) {
    %c0_i32 = arith.constant 0 : i32
    %c0_i32_0 = arith.constant 0 : i32
    %c0_i32_1 = arith.constant 0 : i32
    return %c0_i32, %c0_i32_0 : i32, i32
  }
  func.func @transform_5(%arg0: i32) -> (i32, i32) {
    %c0_i32 = arith.constant 0 : i32
    %c0_i32_0 = arith.constant 0 : i32
    %c0_i32_1 = arith.constant 0 : i32
    return %c0_i32, %c0_i32_0 : i32, i32
  }
  func.func @transform_6(%arg0: i32) -> (i32, i32) {
    %c0_i32 = arith.constant 0 : i32
    %c0_i32_0 = arith.constant 0 : i32
    %c0_i32_1 = arith.constant 0 : i32
    return %c0_i32, %c0_i32_0 : i32, i32
  }
  func.func @transform_7(%arg0: i32) -> (i32, i32) {
    %c0_i32 = arith.constant 0 : i32
    %c0_i32_0 = arith.constant 0 : i32
    return %arg0, %c0_i32 : i32, i32
  }
}

</mosaic_0001>

<bundles_post_ra>
// kernel: tpu_custom_call.1
= control target key start
LH: loop header
LB: loop body
LE: loop exit
PB: predicated region body
PF: predicated region fallthrough
CT: control target
= control target key end

     0   :  { %vm33_vm0 = vcmask 130048   ;;  %vm66_vm1 = vcmask 261120   ;;  %vm120_vm2 = vcmask 31744   ;;  %s213_s1 = inlined_call_operand.vmem [shape: f32[16,32], index: 1, kind: input, shape index: {}]   ;;  %s214_s0 = inlined_call_operand.vmem [shape: f32[8,16], index: 0, kind: input, shape index: {}]   ;;  %s215_s3 = inlined_call_operand.vmem [shape: f32[32,16], index: 3, kind: input, shape index: {}]   ;;  %s216_s2 = inlined_call_operand.vmem [shape: f32[1,32], index: 2, kind: input, shape index: {}]   ;;  %s217_s4 = inlined_call_operand.vmem [shape: f32[1,16], index: 4, kind: input, shape index: {}]   ;;  %s218_s6 = inlined_call_operand.vmem [shape: f32[1,4], index: 6, kind: input, shape index: {}]   ;;  %s219_s5 = inlined_call_operand.vmem [shape: f32[16,4], index: 5, kind: input, shape index: {}]   ;;  %s220_s7 = inlined_call_operand.vmem [shape: f32[8,4], index: 7, kind: output, shape index: {}]  }
   0x1   :  { %v28_v0 = vld [vmem:[%s213_s1 + $0x8] sm:$0xff]  ;;  %v27_v1 = vld [vmem:[%s213_s1] sm:$0xff]  ;;  %v61_v3 = vld [vmem:[%s215_s3 + $0x18] sm:$0xff] }
   0x2   :  { %51 = vmatpush.msra.mxu0 %v28_v0  ;;  %v26_v2 = vld [vmem:[%s214_s0] sm:$0xff]  ;;  %82 = vmatpush.msra.mxu1 %v61_v3  ;;  %v60_v4 = vld [vmem:[%s215_s3 + $0x10] sm:$0xff]  ;;  %v59_v5 = vld [vmem:[%s215_s3 + $0x8] sm:$0xff] }
   0x3   :  { %v58_v6 = vld [vmem:[%s215_s3] sm:$0xff]  ;;  %v92_v11 = vld [vmem:[%s219_s5 + $0x8] sm:$0xff] }
   0x4   :  { %52 = vmatpush.msra.mxu0 %v27_v1  ;;  %83 = vmatpush.msra.mxu1 %v60_v4  ;;  %v129_v7 = vld [vmem:[%s216_s2] ss:$0 sm:$0xff] }
   0x5   :  { %126 = vmatmul.msk.f32.vlgmr.msra.gmra.mxu0 %vm33_vm0, %v26_v2  ;;  %114 = vmatpush.msra.mxu2 %v92_v11  ;;  %v91_v12 = vld [vmem:[%s219_s5] sm:$0xff] }
   0x6   :  { %84 = vmatpush.msra.mxu1 %v59_v5  ;;  %v130_v13 = vld [vmem:[%s217_s4] ss:$0 sm:$0xff] }
   0x7   :  { %115 = vmatpush.msra.mxu2 %v91_v12  ;;  %v131_v17 = vld [vmem:[%s218_s6] ss:$0 sm:$0xff] }
   0x8   :  { %85 = vmatpush.msra.mxu1 %v58_v6 }
  0x82   :  { %v54_v8 = vpop.f32.mrf.mxu0 }
  0x83   :  { %v55_v9 = vadd.f32 %v129_v7, %v54_v8 }
  0x85   :  { %v57_v10 = vmax.f32 %v55_v9, 0.0 }
  0x87   :  { %127 = vmatmul.msk.f32.vlgmr.msra.gmra.mxu1 %vm66_vm1, %v57_v10 }
 0x104   :  { %v87_v14 = vpop.f32.mrf.mxu1 }
 0x105   :  { %v88_v15 = vadd.f32 %v130_v13, %v87_v14 }
 0x107   :  { %v90_v16 = vmax.f32 %v88_v15, 0.0 }
 0x109   :  { %128 = vmatmul.msk.f32.vlgmr.msra.gmra.mxu2 %vm33_vm0, %v90_v16 }
 0x18c   :  { %v117_v18 = vpop.f32.mrf.mxu2 }
 0x18d   :  { %v118_v19 = vadd.f32 %v131_v17, %v117_v18 }
 0x18f   :  { %121 = vst.msk [vmem:[%s220_s7] sm:$0xff] %vm120_vm2, %v118_v19 }

</bundles_post_ra>
